<compile_context>
chip_gen: v7x
topology: tpu7x:2x2x1
jax: 0.10.0
libtpu: 0.0.40
codegen_flags: <defaults>
</compile_context>

<pallas_src>
import re
from functools import partial

import jax
import jax.numpy as jnp
from jax.experimental import pallas as pl
from jax.experimental.pallas import tpu as pltpu


def _round_up(a: int, m: int) -> int:
    return -(-a // m) * m


def _tpu_generation() -> int:
    """Best-effort TPU generation from device_kind; 0 if unknown (-> safe path)."""
    try:
        kind = jax.devices()[0].device_kind  # e.g. "TPU v5 lite", "TPU v6e", "TPU7x"
        m = re.search(r"(\d+)", kind)
        return int(m.group(1)) if m else 0
    except Exception:
        return 0


def _swish_jnp(x: jnp.ndarray) -> jnp.ndarray:
    return x * jax.nn.sigmoid(x)


def _swish_kernel(x_ref, o_ref, *, upcast: bool):
    x = x_ref[...]
    if upcast:
        # v5e and older have no bf16 VPU/EUP -> compute in f32.
        x = x.astype(jnp.float32)
    # sigmoid(x) == 0.5 * (tanh(x/2) + 1): a single EUP transcendental per element.
    sig = 0.5 * jnp.tanh(0.5 * x) + 0.5
    o_ref[...] = (x * sig).astype(o_ref.dtype)


def _swish_flat_aligned(flat: jnp.ndarray, *, target_block_bytes: int,
                        gen: int, num_cores: int) -> jnp.ndarray:
    """Swish on a 1-D array whose length is a multiple of 128."""
    n = flat.shape[0]
    dtype = flat.dtype
    itemsize = jnp.dtype(dtype).itemsize
    # Packed sublane count: 8 for 4-byte, 16 for 2-byte, 32 for 1-byte dtypes.
    pack = max(8, 32 // itemsize)

    # Lane width: largest multiple of 128 dividing n -> lane-dense, contiguous DMAs.
    cols = 128
    for c in (2048, 1024, 512, 256):
        if n % c == 0:
            cols = c
            break
    rows = n // cols
    x2d = flat.reshape(rows, cols)

    # Block rows targeting ~target_block_bytes per grid step.
    tile_rows = max(pack, (target_block_bytes // (itemsize * cols)) // pack * pack)
    if num_cores > 1 and n * itemsize >= (8 << 20):
        # Multi-TC (v7x): >=2 blocks per core so the next block's DMA overlaps compute.
        min_steps = 2 * num_cores
        cap = max(pack, _round_up(pl.cdiv(rows, min_steps), pack))
        tile_rows = min(tile_rows, cap)
    # Clamp to the full extent (allowed even if rows isn't a multiple of 8).
    tile_rows = min(tile_rows, rows)

    upcast = itemsize < 4 and gen < 6  # only v5e-and-older (or unknown) upcast

    out2d = pl.pallas_call(
        partial(_swish_kernel, upcast=upcast),
        out_shape=jax.ShapeDtypeStruct((rows, cols), dtype),
        grid_spec=pltpu.PrefetchScalarGridSpec(
            num_scalar_prefetch=0,
            grid=(pl.cdiv(rows, tile_rows),),
            in_specs=[pl.BlockSpec((tile_rows, cols), lambda i: (i, 0))],
            out_specs=pl.BlockSpec((tile_rows, cols), lambda i: (i, 0)),
        ),
        compiler_params=pltpu.CompilerParams(
            dimension_semantics=("parallel",),
            vmem_limit_bytes=32 << 20,
        ),
        cost_estimate=pl.CostEstimate(
            flops=4 * n,
            transcendentals=n,
            bytes_accessed=2 * n * itemsize,
        ),
        # Mirrors PyTorch inplace=True: output may reuse the input HBM buffer
        # when the caller donates x (XLA inserts a copy otherwise).
        input_output_aliases={0: 0},
    )(x2d)
    return out2d.reshape(-1)


def swish(x: jnp.ndarray, *, target_block_bytes: int = 4 << 20,
          min_pallas_bytes: int = 256 << 10) -> jnp.ndarray:
    """Elementwise Swish on an arbitrary-shaped array via a Pallas TPU kernel."""
    # TODO(synk): PyTorch module mutates x in place (inplace=True); JAX is
    # functional, so we return a new array (input_output_aliases lets XLA reuse
    # the buffer when x is donated).
    orig_shape = x.shape
    n = int(x.size)
    if n == 0:
        return x

    itemsize = jnp.dtype(x.dtype).itemsize
    if n * itemsize < min_pallas_bytes:
        # Tiny input: a pallas_call blocks XLA fusion and its launch overhead
        # dominates; plain jnp is faster and fuses with neighbours.
        return _swish_jnp(x)

    gen = _tpu_generation()
    num_cores = 2 if gen >= 7 else 1  # v7x has 2 TensorCores per chip

    flat = x.reshape(-1)
    if n % 128 == 0:
        out = _swish_flat_aligned(flat, target_block_bytes=target_block_bytes,
                                  gen=gen, num_cores=num_cores)
        return out.reshape(orig_shape)

    # Ragged element count: kernel on the 128-aligned prefix, jnp on the tiny
    # (<128-element) tail. No full-array pad/slice pass.
    # TODO(synk): the concat could be avoided by masking the last block's store
    # in-kernel via scalar prefetch; ragged large inputs are rare, keep it simple.
    n_main = (n // 128) * 128
    if n_main == 0:
        return _swish_jnp(x)
    head = _swish_flat_aligned(flat[:n_main], target_block_bytes=target_block_bytes,
                               gen=gen, num_cores=num_cores)
    tail = _swish_jnp(flat[n_main:])
    return jnp.concatenate([head, tail]).reshape(orig_shape)


if __name__ == "__main__":
    key = jax.random.PRNGKey(0)
    k1, k2, k3, k4, k5 = jax.random.split(key, 5)

    # 1) Module-consistent small NCHW activation; force the Pallas path so the
    #    kernel itself is exercised at this shape.
    x = jax.random.normal(k1, (2, 4, 16, 16), dtype=jnp.float32)
    y_ref = x * jax.nn.sigmoid(x)
    y = swish(x, min_pallas_bytes=0)
    jax.block_until_ready(y)
    assert y.shape == x.shape and y.dtype == x.dtype
    assert jnp.allclose(y, y_ref, atol=1e-5, rtol=1e-5)

    # 2) Larger activation (8 MiB) exercising the tiled multi-block path
    #    (and the >=2-blocks-per-core split on v7x).
    x_big = jax.random.normal(k2, (8, 64, 32, 32), dtype=jnp.float32)
    yb_ref = x_big * jax.nn.sigmoid(x_big)
    yb = swish(x_big)
    jax.block_until_ready(yb)
    assert jnp.allclose(yb, yb_ref, atol=1e-5, rtol=1e-5)

    # 3) Tiny ragged shape -> plain-jnp bypass path.
    x_r = jax.random.normal(k3, (3, 5, 7), dtype=jnp.float32)
    yr = swish(x_r)
    jax.block_until_ready(yr)
    assert jnp.allclose(yr, x_r * jax.nn.sigmoid(x_r), atol=1e-5, rtol=1e-5)

    # 4) Large ragged shape -> kernel on the 128-aligned prefix + jnp tail.
    x_rl = jax.random.normal(k4, (317, 1000), dtype=jnp.float32)
    yrl_ref = x_rl * jax.nn.sigmoid(x_rl)
    yrl = swish(x_rl)
    jax.block_until_ready(yrl)
    assert jnp.allclose(yrl, yrl_ref, atol=1e-5, rtol=1e-5)

    # 5) bf16 activation: native bf16 compute on v6e/v7x, f32 upcast on v5e.
    x_bf = jax.random.normal(k5, (4, 256, 128), dtype=jnp.bfloat16)
    x_bf32 = x_bf.astype(jnp.float32)
    ybf_ref = x_bf32 * jax.nn.sigmoid(x_bf32)
    ybf = swish(x_bf)
    jax.block_until_ready(ybf)
    assert ybf.dtype == jnp.bfloat16
    assert jnp.allclose(ybf.astype(jnp.float32), ybf_ref, atol=5e-2, rtol=5e-2)

    print("KERNEL_OK")
</pallas_src>

<mosaic_0001>
module attributes {stable_mosaic.version = 11 : i64} {
  func.func @_swish_kernel(%arg0: i32, %arg1: memref<1x2048xf32, #tpu.memory_space<vmem>>, %arg2: memref<1x2048xf32, #tpu.memory_space<vmem>>) attributes {dimension_semantics = [#tpu.dimension_semantics<parallel>], iteration_bounds = array<i64: 1>, scalar_prefetch = 0 : i64, scratch_operands = 0 : i64, tpu.core_type = #tpu.core_type<tc>, window_params = [{transform_indices = @transform_0, window_bounds = array<i64: 1, 2048>}, {transform_indices = @transform_1, window_bounds = array<i64: 1, 2048>}]} {
    %c0 = arith.constant 0 : index
    %c0_0 = arith.constant 0 : index
    %0 = vector.load %arg1[%c0, %c0_0] : memref<1x2048xf32, #tpu.memory_space<vmem>>, vector<1x2048xf32>
    %cst = arith.constant 5.000000e-01 : f32
    %1 = vector.broadcast %cst : f32 to vector<1x2048xf32>
    %2 = arith.mulf %1, %0 : vector<1x2048xf32>
    %3 = math.tanh %2 : vector<1x2048xf32>
    %cst_1 = arith.constant 5.000000e-01 : f32
    %4 = vector.broadcast %cst_1 : f32 to vector<1x2048xf32>
    %5 = arith.mulf %4, %3 : vector<1x2048xf32>
    %cst_2 = arith.constant 5.000000e-01 : f32
    %6 = vector.broadcast %cst_2 : f32 to vector<1x2048xf32>
    %7 = arith.addf %5, %6 : vector<1x2048xf32>
    %8 = arith.mulf %0, %7 : vector<1x2048xf32>
    %c0_3 = arith.constant 0 : index
    %c0_4 = arith.constant 0 : index
    %9 = vector.load %arg2[%c0_3, %c0_4] : memref<1x2048xf32, #tpu.memory_space<vmem>>, vector<1x2048xf32>
    tpu.vector_store %arg2[%c0_3, %c0_4], %8 {strides = array<i32>} : memref<1x2048xf32, #tpu.memory_space<vmem>>, vector<1x2048xf32>,
    return
  }
  func.func @transform_0(%arg0: i32) -> (i32, i32) {
    %c0_i32 = arith.constant 0 : i32
    %c0_i32_0 = arith.constant 0 : i32
    return %arg0, %c0_i32 : i32, i32
  }
  func.func @transform_1(%arg0: i32) -> (i32, i32) {
    %c0_i32 = arith.constant 0 : i32
    %c0_i32_0 = arith.constant 0 : i32
    return %arg0, %c0_i32 : i32, i32
  }
}

</mosaic_0001>

<bundles_post_ra>
// kernel: tpu_custom_call.1
= control target key start
LH: loop header
LB: loop body
LE: loop exit
PB: predicated region body
PF: predicated region fallthrough
CT: control target
= control target key end

     0   :  { %6 = vsyncpa [#allocation3], 0  ;;  %s140_s0 = inlined_call_operand.hbm [shape: f32[1,2048], index: 0, kind: input, shape index: {}, may-alias: {0,1}]   ;;  %s141_s1 = inlined_call_operand.hbm [shape: f32[1,2048], index: 1, kind: output, shape index: {}, may-alias: {0,1}]  }
   0x1   :  { %7 = vsyncpa [#allocation4], 0  ;;  %s104_s6 = smov [#allocation2]   ;;  %s56_s10 = scalar_lea.hbm %s140_s0, 256 }
   0x2   :  { %s14_s7 = sshll.u32 %s104_s6, 4  ;;  %p57_p0 = scmp.ne.s32.totalorder %s140_s0, %s56_s10  ;;  %s15_s7 = int_to_ptr.vmem [resolvable:$true] %s14_s7 }
   0x3   :  { %p60_p1 = scmp.lt.u32.totalorder %s56_s10, %s140_s0 }
   0x5   :  { %p62_p2 = pnand %p60_p1, %p57_p0 }
   0x7   :  { %65 = shalt.err (!%p62_p2)
}
   0x8   :  { %s66_s15 = scalar_lea.vmem %s15_s7, 256  ;;  %p71_p4 = scmp.lt.s32.totalorder %s15_s7, %s15_s7 }
   0x9   :  { %p67_p3 = scmp.ne.s32.totalorder %s15_s7, %s66_s15  ;;  %p72_p5 = scmp.lt.s32.totalorder %s66_s15, %s66_s15 }
   0xb   :  { %p73_p6 = por %p72_p5, %p71_p4 }
   0xd   :  { %p74_p7 = pnand %p73_p6, %p67_p3 }
   0xf   :  { %77 = shalt.err (!%p74_p7)
}
  0x10   :  { %17 = dma.hbm_to_vmem [thread:$0]  %s140_s0, 256, %s15_s7, [#allocation3]  }
  0x11   :  { %100 = dma.done.wait [#allocation3], 256  }
  0x12   :  { %101 = vsyncadd [#allocation3], 4294967040  ;;  %v21_v0 = vld [vmem:[#allocation2] sm:$0xff]  ;;  %v22_v1 = vld [vmem:[#allocation2 + $0x8] sm:$0xff]  ;;  %s105_s18 = smov [#allocation5]  }
  0x13   :  { %v23_v2 = vmul.f32 0.5, %v21_v0  ;;  %v24_v3 = vmul.f32 0.5, %v22_v1  ;;  %s41_s19 = sshll.u32 %s105_s18, 4  ;;  %s42_s19 = int_to_ptr.vmem [resolvable:$true] %s41_s19 }
  0x14   :  { %s78_s0 = scalar_lea.vmem %s42_s19, 256  ;;  %p83_p9 = scmp.lt.s32.totalorder %s42_s19, %s42_s19 }
  0x15   :  { %52 = vtanh.f32 %v23_v2  ;;  %p79_p8 = scmp.ne.s32.totalorder %s42_s19, %s78_s0  ;;  %p84_p10 = scmp.lt.s32.totalorder %s78_s0, %s78_s0 }
  0x16   :  { %54 = vtanh.f32 %v24_v3 }
  0x17   :  { %p85_p11 = por %p84_p10, %p83_p9 }
  0x19   :  { %p86_p12 = pnand %p85_p11, %p79_p8 }
  0x1f   :  { %v53_v4 = vpop.eup %52 }
  0x20   :  { %v55_v5 = vpop.eup %54  ;;  %v27_v6 = vmul.f32 0.5, %v53_v4 }
  0x21   :  { %v28_v7 = vmul.f32 0.5, %v55_v5 }
  0x22   :  { %v29_v8 = vadd.f32 0.5, %v27_v6 }
  0x23   :  { %v30_v9 = vadd.f32 0.5, %v28_v7 }
  0x24   :  { %v31_v10 = vmul.f32 %v29_v8, %v21_v0 }
  0x25   :  { %v32_v11 = vmul.f32 %v30_v9, %v22_v1 }
  0x26   :  { %33 = vst [vmem:[#allocation5] sm:$0xff] %v31_v10 }
  0x27   :  { %34 = vst [vmem:[#allocation5 + $0x8] sm:$0xff] %v32_v11 }
  0x28   :  { %89 = shalt.err (!%p86_p12)
}
  0x29   :  { %s90_s22 = scalar_lea.hbm %s141_s1, 256 }
  0x2a   :  { %p91_p13 = scmp.ne.s32.totalorder %s141_s1, %s90_s22  ;;  %p94_p0 = scmp.lt.u32.totalorder %s90_s22, %s141_s1 }
  0x2c   :  { %p96_p1 = pnand %p94_p0, %p91_p13 }
  0x2e   :  { %99 = shalt.err (!%p96_p1)
}
  0x2f   :  { %44 = dma.vmem_to_hbm [thread:$0]  %s42_s19, 256, %s141_s1, [#allocation4]  }
  0x30   :  { %102 = dma.done.wait [#allocation4], 256  }
  0x31   :  { %103 = vsyncadd [#allocation4], 4294967040 }
  0x32   :  { %48 = vsyncpa [#allocation3], 1 }
  0x33   :  { %49 = vsyncpa [#allocation4], 1 }

</bundles_post_ra>
